<compile_context>
chip_gen: v7x
topology: tpu7x:2x2x1
jax: 0.10.0
libtpu: 0.0.40
codegen_flags: <defaults>
</compile_context>

<pallas_src>
import jax
import jax.numpy as jnp
from jax.experimental import pallas as pl
from jax.experimental.pallas import tpu as pltpu


def policy_net_kernel(x_ref, w1_ref, b1_ref, w2_ref, b2_ref, out_ref):
    # fc1: MXU matmul (bf16 operands, f32 accumulation); bias + ReLU in f32.
    h = jnp.dot(x_ref[...], w1_ref[...], preferred_element_type=jnp.float32)
    h = jnp.maximum(h + b1_ref[...], 0.0)

    # fc2: cast activations to the weight dtype for the second MXU pass.
    # NOTE(scaling): for very large hidden_dim, chunk this over the hidden axis
    # (fori_loop accumulating logits) instead of materializing the full h.
    logits = jnp.dot(h.astype(w2_ref.dtype), w2_ref[...],
                     preferred_element_type=jnp.float32) + b2_ref[...]

    # Numerically stable softmax over dim=1. Padded action columns carry a
    # -1e30 bias, so exp() underflows to exactly 0 for them. Exact divide:
    # this kernel is DMA/launch-bound, so the VPU divide is free and keeps
    # every output row summing to 1 at f32 precision.
    m = jnp.max(logits, axis=1, keepdims=True)
    e = jnp.exp(logits - m)
    out_ref[...] = (e / jnp.sum(e, axis=1, keepdims=True)).astype(out_ref.dtype)


def _round_up(n, m):
    return ((n + m - 1) // m) * m


def _pad_feature_dim(n):
    # Lane-dense padding: 128 for small dims; 256 once the real dim is >=256
    # so the 256x256 MXUs (v6e/v7x) see full-width passes.
    return _round_up(n, 256 if n >= 256 else 128)


def _resident_spec(shape):
    # Weights/biases: constant index_map -> DMA'd once, resident across the
    # batch grid. Buffered(1) = single-buffered (no point double-buffering an
    # operand that never changes; halves resident VMEM, matters on v7x).
    try:
        return pl.BlockSpec(shape, lambda i: (0, 0),
                            memory_space=pltpu.MemorySpace.VMEM,
                            pipeline_mode=pl.Buffered(1))
    except (TypeError, AttributeError):
        return pl.BlockSpec(shape, lambda i: (0, 0),
                            memory_space=pltpu.MemorySpace.VMEM)


def make_policy_net(state_dim, action_num, hidden_dim, *,
                    use_bf16=True, max_tile_b=256):
    """Returns (pad_params, forward).

    pad_params(w1t, b1, w2t, b2): pad/cast params ONCE at init; cache result.
    forward(x, params): (B, state_dim) -> (B, action_num) probabilities (jitted).
    Weights are stored transposed vs PyTorch: (in_features, out_features).
    """
    sd_p = _pad_feature_dim(state_dim)
    hd_p = _pad_feature_dim(hidden_dim)
    an_p = _pad_feature_dim(action_num)
    mm_dtype = jnp.bfloat16 if use_bf16 else jnp.float32
    mm_itemsize = jnp.dtype(mm_dtype).itemsize
    sublane = 16 if mm_dtype == jnp.bfloat16 else 8

    def pad_params(w1t, b1, w2t, b2):
        # Zero weights in padded rows/cols -> padded hidden units are exactly 0
        # after ReLU and contribute nothing. Padded action logits get a -1e30
        # bias -> softmax prob exactly 0.
        w1_p = jnp.zeros((sd_p, hd_p), mm_dtype)
        w1_p = w1_p.at[:state_dim, :hidden_dim].set(w1t.astype(mm_dtype))
        b1_p = jnp.zeros((1, hd_p), jnp.float32)
        b1_p = b1_p.at[:, :hidden_dim].set(b1.astype(jnp.float32))
        w2_p = jnp.zeros((hd_p, an_p), mm_dtype)
        w2_p = w2_p.at[:hidden_dim, :action_num].set(w2t.astype(mm_dtype))
        b2_p = jnp.full((1, an_p), -1e30, jnp.float32)
        b2_p = b2_p.at[:, :action_num].set(b2.astype(jnp.float32))
        return w1_p, b1_p, w2_p, b2_p

    @jax.jit
    def forward(x, params):
        w1_p, b1_p, w2_p, b2_p = params
        B = x.shape[0]

        # Batch padding: only to the sublane multiple; pick tile_b so large
        # batches split into >=2 grid steps (shards across v7x's 2 TensorCores
        # via dimension_semantics=("parallel",)) without over-padding.
        b_min = _round_up(B, sublane)
        if b_min <= max_tile_b:
            grid_b, tile_b = 1, b_min
        else:
            grid_b = -(-b_min // max_tile_b)
            tile_b = _round_up(-(-b_min // grid_b), sublane)
        b_p = tile_b * grid_b

        x_p = jnp.zeros((b_p, sd_p), mm_dtype)
        x_p = x_p.at[:B, :state_dim].set(x.astype(mm_dtype))

        def act_spec(d):  # streamed per-grid-step activation/output tiles
            return pl.BlockSpec((tile_b, d), lambda i: (i, 0),
                                memory_space=pltpu.MemorySpace.VMEM)

        # VMEM budget: resident weights (x2 headroom in case single-buffering
        # is unavailable) + double-buffered x/out tiles + f32 intermediates.
        resident = (sd_p * hd_p + hd_p * an_p) * mm_itemsize + (hd_p + an_p) * 4
        streamed = 2 * tile_b * (sd_p * mm_itemsize + an_p * 4)
        interm = tile_b * (hd_p + an_p) * 4
        vmem_limit = int(1.5 * (2 * resident + streamed + interm))
        vmem_limit = min(max(vmem_limit, 32 << 20), 64 << 20)

        flops = 2 * b_p * (sd_p * hd_p + hd_p * an_p)
        bytes_accessed = (b_p * sd_p * mm_itemsize
                          + (sd_p * hd_p + hd_p * an_p) * mm_itemsize
                          + (hd_p + an_p) * 4
                          + b_p * an_p * 4)

        out_p = pl.pallas_call(
            policy_net_kernel,
            out_shape=jax.ShapeDtypeStruct((b_p, an_p), jnp.float32),
            grid=(grid_b,),
            in_specs=[
                act_spec(sd_p),
                _resident_spec((sd_p, hd_p)),
                _resident_spec((1, hd_p)),
                _resident_spec((hd_p, an_p)),
                _resident_spec((1, an_p)),
            ],
            out_specs=act_spec(an_p),
            compiler_params=pltpu.CompilerParams(
                dimension_semantics=("parallel",),
                vmem_limit_bytes=vmem_limit,
            ),
            cost_estimate=pl.CostEstimate(
                flops=flops,
                transcendentals=b_p * an_p,
                bytes_accessed=bytes_accessed,
            ),
        )(x_p, w1_p, b1_p, w2_p, b2_p)

        # Cheap slice back to real rows/columns (fuses with the call under jit).
        return out_p[:B, :action_num]

    return pad_params, forward


def init_params(key, state_dim, action_num, hidden_dim):
    """Deterministic synthetic init (PyTorch-Linear-like uniform ranges)."""
    k1, k2, k3, k4 = jax.random.split(key, 4)
    bound1 = 1.0 / jnp.sqrt(state_dim)
    bound2 = 1.0 / jnp.sqrt(hidden_dim)
    # Stored transposed relative to PyTorch: (in_features, out_features)
    w1t = jax.random.uniform(k1, (state_dim, hidden_dim), jnp.float32, -bound1, bound1)
    b1 = jax.random.uniform(k2, (1, hidden_dim), jnp.float32, -bound1, bound1)
    w2t = jax.random.uniform(k3, (hidden_dim, action_num), jnp.float32, -bound2, bound2)
    b2 = jax.random.uniform(k4, (1, action_num), jnp.float32, -bound2, bound2)
    return w1t, b1, w2t, b2


if __name__ == "__main__":
    batch = 2
    state_dim = 16
    hidden_dim = 32
    action_num = 4

    key = jax.random.PRNGKey(0)
    kx, kp = jax.random.split(key)

    x = jax.random.normal(kx, (batch, state_dim), jnp.float32)
    w1t, b1, w2t, b2 = init_params(kp, state_dim, action_num, hidden_dim)

    pad_params, forward = make_policy_net(state_dim, action_num, hidden_dim)
    params = pad_params(w1t, b1, w2t, b2)       # padded + cast once at init
    params = jax.block_until_ready(params)

    probs = forward(x, params)
    probs = jax.block_until_ready(probs)

    # Reference in plain JAX with the same bf16 operand rounding the MXU sees
    # (accumulation is f32 in both), so the comparison stays tight.
    xr = x.astype(jnp.bfloat16).astype(jnp.float32)
    w1r = w1t.astype(jnp.bfloat16).astype(jnp.float32)
    w2r = w2t.astype(jnp.bfloat16).astype(jnp.float32)
    h_ref = jnp.maximum(xr @ w1r + b1, 0.0)
    logits_ref = h_ref.astype(jnp.bfloat16).astype(jnp.float32) @ w2r + b2
    ref = jax.nn.softmax(logits_ref, axis=1)

    assert probs.shape == (batch, action_num)
    assert jnp.allclose(jnp.sum(probs, axis=1), 1.0, atol=1e-5)
    assert jnp.allclose(probs, ref, atol=2e-3)

    print("KERNEL_OK")
</pallas_src>

<mosaic_0001>
module attributes {stable_mosaic.version = 11 : i64} {
  func.func @policy_net_kernel(%arg0: i32, %arg1: memref<16x128xbf16, #tpu.memory_space<vmem>>, %arg2: memref<128x128xbf16, #tpu.memory_space<vmem>>, %arg3: memref<1x128xf32, #tpu.memory_space<vmem>>, %arg4: memref<128x128xbf16, #tpu.memory_space<vmem>>, %arg5: memref<1x128xf32, #tpu.memory_space<vmem>>, %arg6: memref<16x128xf32, #tpu.memory_space<vmem>>) attributes {dimension_semantics = [#tpu.dimension_semantics<parallel>], iteration_bounds = array<i64: 1>, scalar_prefetch = 0 : i64, scratch_operands = 0 : i64, tpu.core_type = #tpu.core_type<tc>, window_params = [{transform_indices = @transform_0, window_bounds = array<i64: 16, 128>}, {pipeline_mode = #tpu.pipeline_mode<synchronous>, transform_indices = @transform_1, window_bounds = array<i64: 128, 128>}, {pipeline_mode = #tpu.pipeline_mode<synchronous>, transform_indices = @transform_2, window_bounds = array<i64: 1, 128>}, {pipeline_mode = #tpu.pipeline_mode<synchronous>, transform_indices = @transform_3, window_bounds = array<i64: 128, 128>}, {pipeline_mode = #tpu.pipeline_mode<synchronous>, transform_indices = @transform_4, window_bounds = array<i64: 1, 128>}, {transform_indices = @transform_5, window_bounds = array<i64: 16, 128>}]} {
    %c0 = arith.constant 0 : index
    %c0_0 = arith.constant 0 : index
    %0 = vector.load %arg1[%c0, %c0_0] : memref<16x128xbf16, #tpu.memory_space<vmem>>, vector<16x128xbf16>
    %c0_1 = arith.constant 0 : index
    %c0_2 = arith.constant 0 : index
    %1 = vector.load %arg2[%c0_1, %c0_2] : memref<128x128xbf16, #tpu.memory_space<vmem>>, vector<128x128xbf16>
    %cst = arith.constant dense<0.000000e+00> : vector<16x128xf32>
    %2 = tpu.matmul %0, %1, %cst {dimension_numbers = #tpu.dot_dimension_numbers<[1], [0], [0], [1], [0, 0, 1, 1], [], []>} : vector<16x128xbf16>, vector<128x128xbf16>, vector<16x128xf32> -> vector<16x128xf32>
    %c0_3 = arith.constant 0 : index
    %c0_4 = arith.constant 0 : index
    %3 = vector.load %arg3[%c0_3, %c0_4] : memref<1x128xf32, #tpu.memory_space<vmem>>, vector<1x128xf32>
    %4 = vector.broadcast %3 : vector<1x128xf32> to vector<16x128xf32>
    %5 = arith.addf %2, %4 : vector<16x128xf32>
    %cst_5 = arith.constant 0.000000e+00 : f32
    %6 = vector.broadcast %cst_5 : f32 to vector<16x128xf32>
    %7 = arith.maximumf %5, %6 : vector<16x128xf32>
    %8 = arith.truncf %7 : vector<16x128xf32> to vector<16x128xbf16>
    %c0_6 = arith.constant 0 : index
    %c0_7 = arith.constant 0 : index
    %9 = vector.load %arg4[%c0_6, %c0_7] : memref<128x128xbf16, #tpu.memory_space<vmem>>, vector<128x128xbf16>
    %cst_8 = arith.constant dense<0.000000e+00> : vector<16x128xf32>
    %10 = tpu.matmul %8, %9, %cst_8 {dimension_numbers = #tpu.dot_dimension_numbers<[1], [0], [0], [1], [0, 0, 1, 1], [], []>} : vector<16x128xbf16>, vector<128x128xbf16>, vector<16x128xf32> -> vector<16x128xf32>
    %c0_9 = arith.constant 0 : index
    %c0_10 = arith.constant 0 : index
    %11 = vector.load %arg5[%c0_9, %c0_10] : memref<1x128xf32, #tpu.memory_space<vmem>>, vector<1x128xf32>
    %12 = vector.broadcast %11 : vector<1x128xf32> to vector<16x128xf32>
    %13 = arith.addf %10, %12 : vector<16x128xf32>
    %cst_11 = arith.constant dense<0xFF800000> : vector<16xf32>
    %14 = vector.multi_reduction <maximumf>, %13, %cst_11 [1] : vector<16x128xf32> to vector<16xf32>
    %15 = vector.shape_cast %14 : vector<16xf32> to vector<16x1xf32>
    %16 = vector.broadcast %15 : vector<16x1xf32> to vector<16x128xf32>
    %17 = arith.subf %13, %16 : vector<16x128xf32>
    %18 = math.exp %17 : vector<16x128xf32>
    %cst_12 = arith.constant dense<0.000000e+00> : vector<16xf32>
    %19 = vector.multi_reduction <add>, %18, %cst_12 [1] : vector<16x128xf32> to vector<16xf32>
    %20 = vector.shape_cast %19 : vector<16xf32> to vector<16x1xf32>
    %21 = vector.broadcast %20 : vector<16x1xf32> to vector<16x128xf32>
    %22 = arith.divf %18, %21 : vector<16x128xf32>
    %c0_13 = arith.constant 0 : index
    %c0_14 = arith.constant 0 : index
    %23 = vector.load %arg6[%c0_13, %c0_14] : memref<16x128xf32, #tpu.memory_space<vmem>>, vector<16x128xf32>
    tpu.vector_store %arg6[%c0_13, %c0_14], %22 {strides = array<i32>} : memref<16x128xf32, #tpu.memory_space<vmem>>, vector<16x128xf32>,
    return
  }
  func.func @transform_0(%arg0: i32) -> (i32, i32) {
    %c0_i32 = arith.constant 0 : i32
    %c0_i32_0 = arith.constant 0 : i32
    return %arg0, %c0_i32 : i32, i32
  }
  func.func @transform_1(%arg0: i32) -> (i32, i32) {
    %c0_i32 = arith.constant 0 : i32
    %c0_i32_0 = arith.constant 0 : i32
    %c0_i32_1 = arith.constant 0 : i32
    return %c0_i32, %c0_i32_0 : i32, i32
  }
  func.func @transform_2(%arg0: i32) -> (i32, i32) {
    %c0_i32 = arith.constant 0 : i32
    %c0_i32_0 = arith.constant 0 : i32
    %c0_i32_1 = arith.constant 0 : i32
    return %c0_i32, %c0_i32_0 : i32, i32
  }
  func.func @transform_3(%arg0: i32) -> (i32, i32) {
    %c0_i32 = arith.constant 0 : i32
    %c0_i32_0 = arith.constant 0 : i32
    %c0_i32_1 = arith.constant 0 : i32
    return %c0_i32, %c0_i32_0 : i32, i32
  }
  func.func @transform_4(%arg0: i32) -> (i32, i32) {
    %c0_i32 = arith.constant 0 : i32
    %c0_i32_0 = arith.constant 0 : i32
    %c0_i32_1 = arith.constant 0 : i32
    return %c0_i32, %c0_i32_0 : i32, i32
  }
  func.func @transform_5(%arg0: i32) -> (i32, i32) {
    %c0_i32 = arith.constant 0 : i32
    %c0_i32_0 = arith.constant 0 : i32
    return %arg0, %c0_i32 : i32, i32
  }
}

</mosaic_0001>

<bundles_post_ra>
// kernel: forward.1
= control target key start
LH: loop header
LB: loop body
LE: loop exit
PB: predicated region body
PF: predicated region fallthrough
CT: control target
= control target key end

     0   :  { %10 = vsyncpa [#allocation3], 0  ;;  %s541_s0 = inlined_call_operand.vmem [shape: bf16[16,128], index: 0, kind: input, shape index: {}]   ;;  %s542_s1 = inlined_call_operand.hbm [shape: bf16[128,128], index: 1, kind: input, shape index: {}]   ;;  %s543_s2 = inlined_call_operand.vmem [shape: f32[1,128], index: 2, kind: input, shape index: {}]   ;;  %s544_s3 = inlined_call_operand.hbm [shape: bf16[128,128], index: 3, kind: input, shape index: {}]   ;;  %s545_s4 = inlined_call_operand.vmem [shape: f32[1,128], index: 4, kind: input, shape index: {}]   ;;  %s546_s5 = inlined_call_operand.vmem [shape: f32[16,128], index: 5, kind: output, shape index: {}]  }
   0x1   :  { %11 = vsyncpa [#allocation5], 0  ;;  %s466_s18 = smov [#allocation2]   ;;  %s418_s22 = scalar_lea.hbm %s542_s1, 1024 }
   0x2   :  { %s19_s19 = sshll.u32 %s466_s18, 4  ;;  %p419_p0 = scmp.ne.s32.totalorder %s542_s1, %s418_s22  ;;  %s20_s19 = int_to_ptr.vmem [resolvable:$true] %s19_s19 }
   0x3   :  { %p422_p1 = scmp.lt.u32.totalorder %s418_s22, %s542_s1 }
   0x5   :  { %p424_p2 = pnand %p422_p1, %p419_p0 }
   0x7   :  { %427 = shalt.err (!%p424_p2)
}
   0x8   :  { %s428_s27 = scalar_lea.vmem %s20_s19, 1024  ;;  %p433_p4 = scmp.lt.s32.totalorder %s20_s19, %s20_s19 }
   0x9   :  { %p429_p3 = scmp.ne.s32.totalorder %s20_s19, %s428_s27  ;;  %p434_p5 = scmp.lt.s32.totalorder %s428_s27, %s428_s27 }
   0xb   :  { %p435_p6 = por %p434_p5, %p433_p4 }
   0xd   :  { %p436_p7 = pnand %p435_p6, %p429_p3 }
   0xf   :  { %439 = shalt.err (!%p436_p7)
}
  0x10   :  { %s467_s28 = smov 64   ;;  %s468_s29 = smov 4  }
  0x11   :  { %25 = dma.hbm_to_vmem [thread:$0]  %s542_s1, 1024, %s20_s19, [#allocation3], %s467_s28, %s467_s28, %s468_s29  }
  0x12   :  { %s469_s7 = smov [#allocation4]   ;;  %s440_s11 = scalar_lea.hbm %s544_s3, 1024 }
  0x13   :  { %s33_s8 = sshll.u32 %s469_s7, 4  ;;  %p441_p8 = scmp.ne.s32.totalorder %s544_s3, %s440_s11  ;;  %s34_s8 = int_to_ptr.vmem [resolvable:$true] %s33_s8 }
  0x14   :  { %p444_p9 = scmp.lt.u32.totalorder %s440_s11, %s544_s3 }
  0x16   :  { %p446_p10 = pnand %p444_p9, %p441_p8 }
  0x18   :  { %449 = shalt.err (!%p446_p10)
}
  0x19   :  { %s450_s16 = scalar_lea.vmem %s34_s8, 1024  ;;  %p455_p12 = scmp.lt.s32.totalorder %s34_s8, %s34_s8 }
  0x1a   :  { %p451_p11 = scmp.ne.s32.totalorder %s34_s8, %s450_s16  ;;  %p456_p13 = scmp.lt.s32.totalorder %s450_s16, %s450_s16 }
  0x1c   :  { %p457_p0 = por %p456_p13, %p455_p12 }
  0x1e   :  { %p458_p1 = pnand %p457_p0, %p451_p11 }
  0x20   :  { %461 = shalt.err (!%p458_p1)
}
  0x21   :  { %39 = dma.hbm_to_vmem [thread:$0]  %s544_s3, 1024, %s34_s8, [#allocation5], %s467_s28, %s467_s28, %s468_s29  }
  0x22   :  { %462 = dma.done.wait [#allocation3], 1024  }
  0x23   :  { %463 = vsyncadd [#allocation3], 4294966272 }
  0x24   :  { %464 = dma.done.wait [#allocation5], 1024  }
  0x25   :  { %465 = vsyncadd [#allocation5], 4294966272  ;;  %v470_v0 = vmov 0.0   ;;  %vm471_vm0 = vmmov 0   ;;  %v393_v1 = vld [vmem:[#allocation2] sm:$0xff]   ;;  %v394_v2 = vld [vmem:[#allocation2 + $0x8] sm:$0xff]  }
  0x26   :  { %347 = vmatprep.subr.bf16.mxu0 %v470_v0  ;;  %363 = vmatprep.mubr.msk.bf16.mxu0 %vm471_vm0, %v470_v0  ;;  %v395_v3 = vld [vmem:[#allocation2 + $0x10] sm:$0xff]   ;;  %v402_v4 = vld [vmem:[#allocation4] sm:$0xff]   ;;  %v396_v5 = vld [vmem:[#allocation2 + $0x18] sm:$0xff]  }
  0x27   :  { %367 = vmatprep.subr.bf16.mxu1 %v470_v0  ;;  %383 = vmatprep.mubr.msk.bf16.mxu1 %vm471_vm0, %v470_v0  ;;  %v403_v6 = vld [vmem:[#allocation4 + $0x8] sm:$0xff]   ;;  %v397_v7 = vld [vmem:[#allocation2 + $0x20] sm:$0xff]   ;;  %v404_v8 = vld [vmem:[#allocation4 + $0x10] sm:$0xff]  }
  0x28   :  { %348 = vmatpush3.bf16.msra.mxu0 %v393_v1  ;;  %368 = vmatpush3.bf16.msra.mxu1 %v402_v4  ;;  %v398_v9 = vld [vmem:[#allocation2 + $0x28] sm:$0xff]   ;;  %v405_v10 = vld [vmem:[#allocation4 + $0x18] sm:$0xff]   ;;  %v399_v11 = vld [vmem:[#allocation2 + $0x30] sm:$0xff]  }
  0x29   :  { %349 = vmatprep.subr.bf16.mxu0 %v470_v0  ;;  %369 = vmatprep.subr.bf16.mxu1 %v470_v0  ;;  %v406_v12 = vld [vmem:[#allocation4 + $0x20] sm:$0xff]   ;;  %v400_v13 = vld [vmem:[#allocation2 + $0x38] sm:$0xff]   ;;  %v407_v14 = vld [vmem:[#allocation4 + $0x28] sm:$0xff]  }
  0x2a   :  { %v401_v15 = vld [vmem:[%s541_s0] sm:$0xff]   ;;  %v408_v16 = vld [vmem:[#allocation4 + $0x30] sm:$0xff]   ;;  %v409_v17 = vld [vmem:[#allocation4 + $0x38] sm:$0xff]  }
  0x2b   :  { %v310_v18 = vld [vmem:[%s543_s2] ss:$0 sm:$0xff] }
  0x2c   :  { %350 = vmatpush3.bf16.msra.mxu0 %v394_v2  ;;  %370 = vmatpush3.bf16.msra.mxu1 %v403_v6  ;;  %v320_v28 = vld [vmem:[%s545_s4] ss:$0 sm:$0xff] }
  0x2d   :  { %351 = vmatprep.subr.bf16.mxu0 %v470_v0  ;;  %371 = vmatprep.subr.bf16.mxu1 %v470_v0 }
  0x30   :  { %352 = vmatpush3.bf16.msra.mxu0 %v395_v3  ;;  %372 = vmatpush3.bf16.msra.mxu1 %v404_v8 }
  0x31   :  { %353 = vmatprep.subr.bf16.mxu0 %v470_v0  ;;  %373 = vmatprep.subr.bf16.mxu1 %v470_v0 }
  0x34   :  { %354 = vmatpush3.bf16.msra.mxu0 %v396_v5  ;;  %374 = vmatpush3.bf16.msra.mxu1 %v405_v10 }
  0x35   :  { %355 = vmatprep.subr.bf16.mxu0 %v470_v0  ;;  %375 = vmatprep.subr.bf16.mxu1 %v470_v0 }
  0x38   :  { %356 = vmatpush3.bf16.msra.mxu0 %v397_v7  ;;  %376 = vmatpush3.bf16.msra.mxu1 %v406_v12 }
  0x39   :  { %357 = vmatprep.subr.bf16.mxu0 %v470_v0  ;;  %377 = vmatprep.subr.bf16.mxu1 %v470_v0 }
  0x3c   :  { %358 = vmatpush3.bf16.msra.mxu0 %v398_v9  ;;  %378 = vmatpush3.bf16.msra.mxu1 %v407_v14 }
  0x3d   :  { %359 = vmatprep.subr.bf16.mxu0 %v470_v0  ;;  %379 = vmatprep.subr.bf16.mxu1 %v470_v0 }
  0x40   :  { %360 = vmatpush3.bf16.msra.mxu0 %v399_v11  ;;  %380 = vmatpush3.bf16.msra.mxu1 %v408_v16 }
  0x41   :  { %361 = vmatprep.subr.bf16.mxu0 %v470_v0  ;;  %381 = vmatprep.subr.bf16.mxu1 %v470_v0 }
  0x44   :  { %362 = vmatpush3.bf16.msra.mxu0 %v400_v13  ;;  %382 = vmatpush3.bf16.msra.mxu1 %v409_v17 }
  0x47   :  { %364 = vmatmul.mubr.bf16.vlgmr.msra.gmra.mrb[0].mxu0 %v401_v15 }
 0x11a   :  { %v162_v19 = vpop.f32.mrb[0].mxu0 }
 0x11b   :  { %v163_v20 = vadd.f32 %v310_v18, %v162_v19  ;;  %v365_v21 = vpop.f32.mrb[1].mxu0 }
 0x11c   :  { %v165_v22 = vpop.f32.mrb[2].mxu0 }
 0x11d   :  { %v166_v23 = vadd.f32 %v310_v18, %v165_v22  ;;  %v366_v24 = vpop.f32.mrb[3].mxu0  ;;  %v169_v25 = vmax.f32 %v163_v20, 0.0 }
 0x11f   :  { %v170_v26 = vmax.f32 %v166_v23, 0.0 }
 0x121   :  { %v171_v27 = vpack.c.bf16 %v170_v26, %v169_v25 }
 0x123   :  { %384 = vmatmul.mubr.bf16.vlgmr.msra.gmra.mrb[0].mxu1 %v171_v27 }
 0x1f6   :  { %v277_v29 = vpop.f32.mrb[0].mxu1 }
 0x1f7   :  { %v278_v30 = vadd.f32 %v320_v28, %v277_v29  ;;  %v385_v31 = vpop.f32.mrb[1].mxu1 }
 0x1f8   :  { %v280_v32 = vpop.f32.mrb[2].mxu1 }
 0x1f9   :  { %284 = vmax.xlane.f32.xlu0 %v278_v30  ;;  %v386_v33 = vpop.f32.mrb[3].mxu1  ;;  %v281_v34 = vadd.f32 %v320_v28, %v280_v32 }
 0x1fd   :  { %286 = vmax.xlane.f32.xlu0 %v281_v34 }
 0x286   :  { %v285_v35 = vpop.xlane.xlu0 %284 }
 0x287   :  { %v288_v36 = vsub.f32 %v278_v30, %v285_v35 }
 0x289   :  { %v290_v37 = vmul.f32 1.442695, %v288_v36 }
 0x28a   :  { %v287_v38 = vpop.xlane.xlu0 %286 }
 0x28b   :  { %410 = vpow2.f32 %v290_v37  ;;  %v289_v39 = vsub.f32 %v281_v34, %v287_v38 }
 0x28d   :  { %v292_v40 = vmul.f32 1.442695, %v289_v39 }
 0x28f   :  { %412 = vpow2.f32 %v292_v40 }
 0x295   :  { %v411_v41 = vpop.eup %410 }
 0x296   :  { %294 = vadd.xlane.f32.xlu1 %v411_v41 }
 0x299   :  { %v413_v42 = vpop.eup %412 }
 0x29a   :  { %296 = vadd.xlane.f32.xlu1 %v413_v42 }
 0x323   :  { %v295_v43 = vpop.xlane.xlu1 %294 }
 0x324   :  { %414 = vrcp.f32 %v295_v43 }
 0x327   :  { %v297_v44 = vpop.xlane.xlu1 %296 }
 0x328   :  { %416 = vrcp.f32 %v297_v44 }
 0x32e   :  { %v415_v45 = vpop.eup %414 }
 0x32f   :  { %v299_v46 = vmul.f32 %v415_v45, %v411_v41 }
 0x331   :  { %302 = vst [vmem:[%s546_s5] sm:$0xff] %v299_v46 }
 0x332   :  { %v417_v47 = vpop.eup %416 }
 0x333   :  { %v301_v48 = vmul.f32 %v417_v47, %v413_v42 }
 0x335   :  { %303 = vst [vmem:[%s546_s5 + $0x8] sm:$0xff] %v301_v48 }
 0x336   :  { %308 = vsyncpa [#allocation3], 1 }
 0x337   :  { %309 = vsyncpa [#allocation5], 1 }

</bundles_post_ra>
